<compile_context>
chip_gen: v6e
topology: v6e:2x2x1
jax: 0.10.0
libtpu: 0.0.40
codegen_flags: <defaults>
</compile_context>

<pallas_src>
import functools

import numpy as np

import jax
import jax.numpy as jnp
from jax.experimental import pallas as pl
from jax.experimental.pallas import tpu as pltpu


_MASK_PAD = -1e30  # additive mask for padded key rows (finite: no inf-inf NaNs)


def _round_up(x, m):
    return ((x + m - 1) // m) * m


def _choose_rows(s, cap):
    """Row-tile: whole (8-aligned) segment if it fits under `cap`, otherwise
    the 128-multiple <= cap that minimizes pad waste."""
    s8 = _round_up(s, 8)
    if s8 <= cap:
        return s8
    best, best_pad = cap, _round_up(s, cap) - s
    for ts in (512, 384, 256, 128):
        if ts > cap:
            continue
        pad = _round_up(s, ts) - s
        if pad < best_pad:
            best, best_pad = ts, pad
    return best


# ---------------------------------------------------------------------------
# Flash attention (online softmax, KV-tiled)
# ---------------------------------------------------------------------------
def _flash_kernel(q_ref, k_ref, v_ref, mask_ref, o_ref, m_sc, l_sc, acc_sc):
    ki = pl.program_id(2)

    @pl.when(ki == 0)
    def _():
        m_sc[...] = jnp.full_like(m_sc, -jnp.inf)
        l_sc[...] = jnp.zeros_like(l_sc)
        acc_sc[...] = jnp.zeros_like(acc_sc)

    # [nh, tq, dh] x [nh, tk, dh] -> [nh, tq, tk]; f32 MXU accumulation.
    s = jnp.einsum("hqd,hkd->hqk", q_ref[...], k_ref[...],
                   preferred_element_type=jnp.float32)
    s = s + mask_ref[...].astype(jnp.float32)          # (1, tk) key-broadcast mask

    m_prev = m_sc[...]
    m_new = jnp.maximum(m_prev, jnp.max(s, axis=-1, keepdims=True))
    alpha = jnp.exp(m_prev - m_new)
    p = jnp.exp(s - m_new)
    l_sc[...] = alpha * l_sc[...] + jnp.sum(p, axis=-1, keepdims=True)
    acc_sc[...] = alpha * acc_sc[...] + jnp.einsum(
        "hqk,hkd->hqd", p.astype(v_ref.dtype), v_ref[...],
        preferred_element_type=jnp.float32)
    m_sc[...] = m_new

    @pl.when(ki == pl.num_programs(2) - 1)
    def _():
        o_ref[...] = (acc_sc[...] / l_sc[...]).astype(o_ref.dtype)


def flash_attention(q, k, v, mask_k, *, q_tile_cap=128, kv_tile_cap=256):
    """q: [B, nh, Sq, dh]; k, v: [B, nh, Sk, dh]; mask_k: [B, 1, Sk] additive
    (broadcast over heads and queries). Returns [B, nh, Sq, dh]."""
    B, nh, Sq, dh = q.shape
    Sk = k.shape[2]

    tq = _choose_rows(Sq, q_tile_cap)
    tk = _choose_rows(Sk, kv_tile_cap)
    sq_p = _round_up(Sq, tq)
    sk_p = _round_up(Sk, tk)

    if sq_p != Sq:
        q = jnp.pad(q, ((0, 0), (0, 0), (0, sq_p - Sq), (0, 0)))
    if sk_p != Sk:
        k = jnp.pad(k, ((0, 0), (0, 0), (0, sk_p - Sk), (0, 0)))
        v = jnp.pad(v, ((0, 0), (0, 0), (0, sk_p - Sk), (0, 0)))
        mask_k = jnp.pad(mask_k, ((0, 0), (0, 0), (0, sk_p - Sk)),
                         constant_values=_MASK_PAD)

    n_q, n_k = sq_p // tq, sk_p // tk
    act = q.dtype.itemsize

    # Double-buffered q/k/v/out blocks + mask + scratch + in-flight probs.
    vmem_est = (2 * nh * (2 * tq + 2 * tk) * dh * act
                + 2 * tk * 4
                + nh * tq * (dh + 2) * 4
                + nh * tq * tk * 4)
    vmem_limit = int(min(max(vmem_est + (8 << 20), 32 << 20), 56 << 20))

    cost = pl.CostEstimate(
        flops=4 * B * nh * sq_p * sk_p * dh,
        transcendentals=B * nh * sq_p * sk_p,
        bytes_accessed=act * B * nh * dh * (2 * sq_p + 2 * n_q * sk_p),
    )

    out = pl.pallas_call(
        _flash_kernel,
        out_shape=jax.ShapeDtypeStruct((B, nh, sq_p, dh), q.dtype),
        grid_spec=pltpu.PrefetchScalarGridSpec(
            num_scalar_prefetch=0,
            grid=(B, n_q, n_k),
            in_specs=[
                pl.BlockSpec((None, nh, tq, dh), lambda b, qi, ki: (b, 0, qi, 0)),
                pl.BlockSpec((None, nh, tk, dh), lambda b, qi, ki: (b, 0, ki, 0)),
                pl.BlockSpec((None, nh, tk, dh), lambda b, qi, ki: (b, 0, ki, 0)),
                pl.BlockSpec((None, 1, tk), lambda b, qi, ki: (b, 0, ki)),
            ],
            out_specs=pl.BlockSpec((None, nh, tq, dh),
                                   lambda b, qi, ki: (b, 0, qi, 0)),
            scratch_shapes=[
                pltpu.VMEM((nh, tq, 1), jnp.float32),   # running max
                pltpu.VMEM((nh, tq, 1), jnp.float32),   # running denom
                pltpu.VMEM((nh, tq, dh), jnp.float32),  # accumulator
            ]),
        compiler_params=pltpu.CompilerParams(
            dimension_semantics=("parallel", "parallel", "arbitrary"),
            vmem_limit_bytes=vmem_limit),
        cost_estimate=cost,
    )(q, k, v, mask_k)

    if sq_p != Sq:
        out = out[:, :, :Sq, :]
    return out


# ---------------------------------------------------------------------------
# Fused SelfOutput (dense + residual + LayerNorm), one branch per call
# ---------------------------------------------------------------------------
def _self_output_kernel(x_ref, res_ref, w_ref, p_ref, o_ref, *, eps):
    # nn.Linear: x @ W^T via dot_general contracting the "in" dim of the
    # PyTorch-layout weight (no transpose in the wrapper), f32 accumulation.
    y = jax.lax.dot_general(x_ref[...], w_ref[...], (((1,), (1,)), ((), ())),
                            preferred_element_type=jnp.float32)
    y = y + p_ref[0:1, :].astype(jnp.float32)          # bias
    # Dropout (eval mode) == identity; residual add.
    y = y + res_ref[...].astype(jnp.float32)
    # Two-pass (centered) LayerNorm statistics -- no E[y^2]-E[y]^2 cancellation.
    mean = jnp.mean(y, axis=-1, keepdims=True)
    yc = y - mean
    var = jnp.mean(yc * yc, axis=-1, keepdims=True)
    yhat = yc * jax.lax.rsqrt(var + eps)
    o_ref[...] = (yhat * p_ref[1:2, :].astype(jnp.float32)
                  + p_ref[2:3, :].astype(jnp.float32)).astype(o_ref.dtype)


def fused_self_output(ctx, residual, w, b, gamma, beta, *, eps=1e-12,
                      max_tile_rows=512, out_dtype=None):
    """dense -> (+ residual) -> LayerNorm for one branch. [B, S, H] -> [B, S, H]."""
    B, S, H = ctx.shape
    out_dtype = out_dtype or ctx.dtype

    ts = _choose_rows(S, max_tile_rows)
    s_p = _round_up(S, ts)
    if s_p != S:
        ctx = jnp.pad(ctx, ((0, 0), (0, s_p - S), (0, 0)))
        residual = jnp.pad(residual, ((0, 0), (0, s_p - S), (0, 0)))

    w = w.astype(ctx.dtype)                 # MXU operands in the activation dtype
    p = jnp.stack([b, gamma, beta])         # [3, H] packed bias / gamma / beta

    act = ctx.dtype.itemsize
    vmem_est = (2 * 3 * ts * H * act + H * H * w.dtype.itemsize
                + 3 * H * p.dtype.itemsize)
    vmem_limit = int(min(max(vmem_est + (8 << 20), 32 << 20), 56 << 20))

    cost = pl.CostEstimate(
        flops=2 * B * s_p * H * H + 10 * B * s_p * H,
        transcendentals=B * s_p,
        bytes_accessed=act * 3 * B * s_p * H + 4 * (H * H + 3 * H),
    )

    out = pl.pallas_call(
        functools.partial(_self_output_kernel, eps=eps),
        out_shape=jax.ShapeDtypeStruct((B, s_p, H), out_dtype),
        grid_spec=pltpu.PrefetchScalarGridSpec(
            num_scalar_prefetch=0,
            grid=(B, s_p // ts),
            in_specs=[
                pl.BlockSpec((None, ts, H), lambda bi, i: (bi, i, 0)),
                pl.BlockSpec((None, ts, H), lambda bi, i: (bi, i, 0)),
                # Constant block index -> weight/params stay VMEM-resident.
                # TODO(synk): pl.Buffered(1) here to halve weight VMEM on v7x.
                pl.BlockSpec((H, H), lambda bi, i: (0, 0)),
                pl.BlockSpec((3, H), lambda bi, i: (0, 0)),
            ],
            out_specs=pl.BlockSpec((None, ts, H), lambda bi, i: (bi, i, 0)),
        ),
        compiler_params=pltpu.CompilerParams(
            dimension_semantics=("parallel", "parallel"),
            vmem_limit_bytes=vmem_limit),
        cost_estimate=cost,
    )(ctx, residual, w, p)

    if s_p != S:
        out = out[:, :S, :]
    return out


# ---------------------------------------------------------------------------
# Projections (XLA): 6 Linears -> 3 stacked matmuls, scale folded into Q
# ---------------------------------------------------------------------------
def _qkv_projections(word_hidden, entity_hidden, params, *, num_heads,
                     entity_aware_attention, query_pos):
    B, S_tok, H = word_hidden.shape
    S_ent = entity_hidden.shape[1]
    dh = H // num_heads
    scale = 1.0 / float(np.sqrt(dh))

    pos_ent = entity_hidden if query_pos is None else (entity_hidden + query_pos) * 0.5

    # Token branch: Q/K/V batched into one [3H, H] matmul.
    w_tok = jnp.concatenate([params["q_w"] * scale, params["k_w"], params["v_w"]], 0)
    b_tok = jnp.concatenate([params["q_b"] * scale, params["k_b"], params["v_b"]], 0)
    qkv = jnp.einsum("bsh,oh->bso", word_hidden, w_tok) + b_tok
    qkv = qkv.reshape(B, S_tok, 3, num_heads, dh).transpose(2, 0, 3, 1, 4)
    q_tok, k_tok, v_tok = qkv[0], qkv[1], qkv[2]

    if entity_aware_attention:
        qw, qb = params["e_q_w"], params["e_q_b"]
        kw, kb = params["e_k_w"], params["e_k_b"]
        vw, vb = params["e_v_w"], params["e_v_b"]
    else:
        qw, qb = params["q_w"], params["q_b"]
        kw, kb = params["k_w"], params["k_b"]
        vw, vb = params["v_w"], params["v_b"]

    # Entity branch: Q/K batched (same pos-aware input); V on raw entity states.
    w_qk = jnp.concatenate([qw * scale, kw], 0)
    b_qk = jnp.concatenate([qb * scale, kb], 0)
    qk = jnp.einsum("bsh,oh->bso", pos_ent, w_qk) + b_qk
    qk = qk.reshape(B, S_ent, 2, num_heads, dh).transpose(2, 0, 3, 1, 4)
    q_ent, k_ent = qk[0], qk[1]
    v_ent = (jnp.einsum("bsh,oh->bso", entity_hidden, vw) + vb
             ).reshape(B, S_ent, num_heads, dh).transpose(0, 2, 1, 3)

    # Only K/V need the [token ++ entity] concat (Q stays per-branch).
    k = jnp.concatenate([k_tok, k_ent], axis=2)
    v = jnp.concatenate([v_tok, v_ent], axis=2)
    return q_tok, q_ent, k, v


# ---------------------------------------------------------------------------
# EntityAwareBertAttention.forward
# ---------------------------------------------------------------------------
def entity_aware_bert_attention(word_hidden, entity_hidden, attention_mask,
                                params, query_pos=None, *, num_heads,
                                entity_aware_attention=True,
                                entity_aware_selfout=True, eps=1e-12,
                                compute_dtype=None):
    B, S_tok, H = word_hidden.shape
    S_ent = entity_hidden.shape[1]
    S_tot = S_tok + S_ent
    io_dtype = word_hidden.dtype
    cdt = compute_dtype or io_dtype      # pass jnp.bfloat16 to halve HBM traffic

    q_tok, q_ent, k, v = _qkv_projections(
        word_hidden, entity_hidden, params, num_heads=num_heads,
        entity_aware_attention=entity_aware_attention, query_pos=query_pos)
    q_tok, q_ent, k, v = (t.astype(cdt) for t in (q_tok, q_ent, k, v))

    mask = jnp.asarray(attention_mask)
    try:
        key_broadcast = (np.broadcast_shapes(tuple(mask.shape), (B, 1, 1, S_tot))
                         == (B, 1, 1, S_tot))
    except ValueError:
        key_broadcast = False

    if key_broadcast:
        mask_k = jnp.broadcast_to(mask.astype(jnp.float32),
                                  (B, 1, 1, S_tot)).reshape(B, 1, S_tot)
        ctx_tok = flash_attention(q_tok, k, v, mask_k)
        ctx_ent = flash_attention(q_ent, k, v, mask_k)
    else:
        # TODO(synk): Pallas flash path for per-query / per-head masks.
        q = jnp.concatenate([q_tok, q_ent], axis=2)
        s = jnp.einsum("bhqd,bhkd->bhqk", q, k,
                       preferred_element_type=jnp.float32) + mask
        p = jax.nn.softmax(s, axis=-1).astype(v.dtype)
        ctx = jnp.einsum("bhqk,bhkd->bhqd", p, v)
        ctx_tok, ctx_ent = ctx[:, :, :S_tok, :], ctx[:, :, S_tok:, :]

    ctx_tok = ctx_tok.transpose(0, 2, 1, 3).reshape(B, S_tok, H)
    ctx_ent = ctx_ent.transpose(0, 2, 1, 3).reshape(B, S_ent, H)

    word_out = fused_self_output(
        ctx_tok, word_hidden.astype(cdt), params["dense_w"], params["dense_b"],
        params["ln_g"], params["ln_b"], eps=eps, out_dtype=io_dtype)
    if entity_aware_selfout:
        ent_out = fused_self_output(
            ctx_ent, entity_hidden.astype(cdt), params["e_dense_w"],
            params["e_dense_b"], params["e_ln_g"], params["e_ln_b"],
            eps=eps, out_dtype=io_dtype)
    else:
        ent_out = fused_self_output(
            ctx_ent, entity_hidden.astype(cdt), params["dense_w"],
            params["dense_b"], params["ln_g"], params["ln_b"],
            eps=eps, out_dtype=io_dtype)
    return word_out, ent_out


# ---------------------------------------------------------------------------
# Reference: literal port of the PyTorch forward
# ---------------------------------------------------------------------------
def _reference_forward(word_hidden, entity_hidden, attention_mask, params, *,
                       num_heads, entity_aware_attention, entity_aware_selfout,
                       eps, query_pos=None):
    B, S_tok, H = word_hidden.shape
    dh = H // num_heads

    def lin(x, w, b): return x @ w.T + b
    def t4s(x): return x.reshape(B, -1, num_heads, dh).transpose(0, 2, 1, 3)

    pos_ent = entity_hidden if query_pos is None else (entity_hidden + query_pos) / 2
    w2w_q = t4s(lin(word_hidden, params["q_w"], params["q_b"]))
    w2w_k = t4s(lin(word_hidden, params["k_w"], params["k_b"]))
    w2w_v = t4s(lin(word_hidden, params["v_w"], params["v_b"]))
    if entity_aware_attention:
        e2w_q = t4s(lin(pos_ent, params["e_q_w"], params["e_q_b"]))
        e2w_k = t4s(lin(pos_ent, params["e_k_w"], params["e_k_b"]))
        e2w_v = t4s(lin(entity_hidden, params["e_v_w"], params["e_v_b"]))
    else:
        e2w_q = t4s(lin(pos_ent, params["q_w"], params["q_b"]))
        e2w_k = t4s(lin(pos_ent, params["k_w"], params["k_b"]))
        e2w_v = t4s(lin(entity_hidden, params["v_w"], params["v_b"]))

    w2w = w2w_q @ w2w_k.transpose(0, 1, 3, 2)
    w2e = w2w_q @ e2w_k.transpose(0, 1, 3, 2)
    e2w = e2w_q @ w2w_k.transpose(0, 1, 3, 2)
    e2e = e2w_q @ e2w_k.transpose(0, 1, 3, 2)
    scores = jnp.concatenate(
        [jnp.concatenate([w2w, w2e], axis=3),
         jnp.concatenate([e2w, e2e], axis=3)], axis=2)
    scores = scores / dh ** 0.5 + attention_mask
    probs = jnp.exp(jax.nn.log_softmax(scores, axis=-1))
    value = jnp.concatenate([w2w_v, e2w_v], axis=2)
    ctx = (probs @ value).transpose(0, 2, 1, 3).reshape(B, -1, H)
    tok_ctx, ent_ctx = ctx[:, :S_tok], ctx[:, S_tok:]

    def self_out(x, res, w, b, g, be):
        y = x @ w.T + b + res
        mu = y.mean(-1, keepdims=True)
        var = ((y - mu) ** 2).mean(-1, keepdims=True)
        return (y - mu) / jnp.sqrt(var + eps) * g + be

    tok = self_out(tok_ctx, word_hidden, params["dense_w"], params["dense_b"],
                   params["ln_g"], params["ln_b"])
    if entity_aware_selfout:
        ent = self_out(ent_ctx, entity_hidden, params["e_dense_w"],
                       params["e_dense_b"], params["e_ln_g"], params["e_ln_b"])
    else:
        ent = self_out(ent_ctx, entity_hidden, params["dense_w"],
                       params["dense_b"], params["ln_g"], params["ln_b"])
    out = jnp.concatenate([tok, ent], axis=1)
    return out[:, :S_tok], out[:, S_tok:]


if __name__ == "__main__":
    # NOTE: demo shapes (H=32, dh=8) are deliberately tiny; tile/perf tuning
    # should be re-checked at production H (>=768, dh=64).
    B, S_TOK, S_ENT, H, NUM_HEADS = 2, 8, 8, 32, 4
    key = jax.random.PRNGKey(0)
    ks = jax.random.split(key, 26)

    word_hidden = jax.random.normal(ks[0], (B, S_TOK, H), jnp.float32)
    entity_hidden = jax.random.normal(ks[1], (B, S_ENT, H), jnp.float32)
    query_pos = jax.random.normal(ks[2], (B, S_ENT, H), jnp.float32)
    # Additive mask over the concatenated [token ++ entity] key axis.
    mask_bits = jax.random.bernoulli(ks[3], 0.2, (B, 1, 1, S_TOK + S_ENT))
    attention_mask = jnp.where(mask_bits, -1e4, 0.0).astype(jnp.float32)

    params = {}
    names = ["q", "k", "v", "e_q", "e_k", "e_v", "dense", "e_dense"]
    for idx, nm in enumerate(names):
        params[f"{nm}_w"] = 0.05 * jax.random.normal(ks[4 + 2 * idx], (H, H), jnp.float32)
        params[f"{nm}_b"] = 0.02 * jax.random.normal(ks[5 + 2 * idx], (H,), jnp.float32)
    params["ln_g"] = 1.0 + 0.1 * jax.random.normal(ks[20], (H,), jnp.float32)
    params["ln_b"] = 0.1 * jax.random.normal(ks[21], (H,), jnp.float32)
    params["e_ln_g"] = 1.0 + 0.1 * jax.random.normal(ks[22], (H,), jnp.float32)
    params["e_ln_b"] = 0.1 * jax.random.normal(ks[23], (H,), jnp.float32)

    fwd = jax.jit(functools.partial(
        entity_aware_bert_attention, num_heads=NUM_HEADS,
        entity_aware_attention=True, entity_aware_selfout=True, eps=1e-12))
    word_out, ent_out = fwd(word_hidden, entity_hidden, attention_mask,
                            params, query_pos)
    jax.block_until_ready((word_out, ent_out))

    assert word_out.shape == (B, S_TOK, H), word_out.shape
    assert ent_out.shape == (B, S_ENT, H), ent_out.shape

    ref_word, ref_ent = _reference_forward(
        word_hidden, entity_hidden, attention_mask, params,
        num_heads=NUM_HEADS, entity_aware_attention=True,
        entity_aware_selfout=True, eps=1e-12, query_pos=query_pos)

    err_w = float(jnp.max(jnp.abs(word_out - ref_word)))
    err_e = float(jnp.max(jnp.abs(ent_out - ref_ent)))
    assert err_w < 1e-4 and err_e < 1e-4, (err_w, err_e)

    print("KERNEL_OK")
</pallas_src>

<mosaic_0001>
module attributes {stable_mosaic.version = 11 : i64} {
  func.func @_self_output_kernel(%arg0: i32, %arg1: i32, %arg2: memref<1x8x32xf32, #tpu.memory_space<vmem>>, %arg3: memref<1x8x32xf32, #tpu.memory_space<vmem>>, %arg4: memref<32x32xf32, #tpu.memory_space<vmem>>, %arg5: memref<3x32xf32, #tpu.memory_space<vmem>>, %arg6: memref<1x8x32xf32, #tpu.memory_space<vmem>>) attributes {dimension_semantics = [#tpu.dimension_semantics<parallel>, #tpu.dimension_semantics<parallel>], iteration_bounds = array<i64: 2, 1>, scalar_prefetch = 0 : i64, scratch_operands = 0 : i64, tpu.core_type = #tpu.core_type<tc>, window_params = [{transform_indices = @transform_0, window_bounds = array<i64: 1, 8, 32>}, {transform_indices = @transform_1, window_bounds = array<i64: 1, 8, 32>}, {pipeline_mode = #tpu.pipeline_mode<synchronous>, transform_indices = @transform_2, window_bounds = array<i64: 32, 32>}, {pipeline_mode = #tpu.pipeline_mode<synchronous>, transform_indices = @transform_3, window_bounds = array<i64: 3, 32>}, {transform_indices = @transform_4, window_bounds = array<i64: 1, 8, 32>}]} {
    %c0 = arith.constant 0 : index
    %c0_0 = arith.constant 0 : index
    %c0_1 = arith.constant 0 : index
    %0 = vector.load %arg2[%c0, %c0_0, %c0_1] : memref<1x8x32xf32, #tpu.memory_space<vmem>>, vector<1x8x32xf32>
    %1 = vector.shape_cast %0 : vector<1x8x32xf32> to vector<8x32xf32>
    %c0_2 = arith.constant 0 : index
    %c0_3 = arith.constant 0 : index
    %2 = vector.load %arg4[%c0_2, %c0_3] : memref<32x32xf32, #tpu.memory_space<vmem>>, vector<32x32xf32>
    %cst = arith.constant dense<0.000000e+00> : vector<8x32xf32>
    %3 = tpu.matmul %1, %2, %cst {dimension_numbers = #tpu.dot_dimension_numbers<[1], [1], [0], [0], [0, 0, 1, 0], [], []>} : vector<8x32xf32>, vector<32x32xf32>, vector<8x32xf32> -> vector<8x32xf32>
    %c0_4 = arith.constant 0 : index
    %c0_5 = arith.constant 0 : index
    %4 = vector.load %arg5[%c0_4, %c0_5] : memref<3x32xf32, #tpu.memory_space<vmem>>, vector<1x32xf32>
    %5 = vector.broadcast %4 : vector<1x32xf32> to vector<8x32xf32>
    %6 = arith.addf %3, %5 : vector<8x32xf32>
    %c0_6 = arith.constant 0 : index
    %c0_7 = arith.constant 0 : index
    %c0_8 = arith.constant 0 : index
    %7 = vector.load %arg3[%c0_6, %c0_7, %c0_8] : memref<1x8x32xf32, #tpu.memory_space<vmem>>, vector<1x8x32xf32>
    %8 = vector.shape_cast %7 : vector<1x8x32xf32> to vector<8x32xf32>
    %9 = arith.addf %6, %8 : vector<8x32xf32>
    %cst_9 = arith.constant dense<0.000000e+00> : vector<8xf32>
    %10 = vector.multi_reduction <add>, %9, %cst_9 [1] : vector<8x32xf32> to vector<8xf32>
    %11 = vector.shape_cast %10 : vector<8xf32> to vector<8x1xf32>
    %cst_10 = arith.constant 3.200000e+01 : f32
    %12 = vector.broadcast %cst_10 : f32 to vector<8x1xf32>
    %13 = arith.divf %11, %12 : vector<8x1xf32>
    %14 = vector.broadcast %13 : vector<8x1xf32> to vector<8x32xf32>
    %15 = arith.subf %9, %14 : vector<8x32xf32>
    %16 = arith.mulf %15, %15 : vector<8x32xf32>
    %cst_11 = arith.constant dense<0.000000e+00> : vector<8xf32>
    %17 = vector.multi_reduction <add>, %16, %cst_11 [1] : vector<8x32xf32> to vector<8xf32>
    %18 = vector.shape_cast %17 : vector<8xf32> to vector<8x1xf32>
    %cst_12 = arith.constant 3.200000e+01 : f32
    %19 = vector.broadcast %cst_12 : f32 to vector<8x1xf32>
    %20 = arith.divf %18, %19 : vector<8x1xf32>
    %cst_13 = arith.constant 9.99999996E-13 : f32
    %21 = vector.broadcast %cst_13 : f32 to vector<8x1xf32>
    %22 = arith.addf %20, %21 : vector<8x1xf32>
    %23 = math.rsqrt %22 : vector<8x1xf32>
    %24 = vector.broadcast %23 : vector<8x1xf32> to vector<8x32xf32>
    %25 = arith.mulf %15, %24 : vector<8x32xf32>
    %c1 = arith.constant 1 : index
    %c0_14 = arith.constant 0 : index
    %26 = vector.load %arg5[%c1, %c0_14] : memref<3x32xf32, #tpu.memory_space<vmem>>, vector<1x32xf32>
    %27 = vector.broadcast %26 : vector<1x32xf32> to vector<8x32xf32>
    %28 = arith.mulf %25, %27 : vector<8x32xf32>
    %c2 = arith.constant 2 : index
    %c0_15 = arith.constant 0 : index
    %29 = vector.load %arg5[%c2, %c0_15] : memref<3x32xf32, #tpu.memory_space<vmem>>, vector<1x32xf32>
    %30 = vector.broadcast %29 : vector<1x32xf32> to vector<8x32xf32>
    %31 = arith.addf %28, %30 : vector<8x32xf32>
    %c0_16 = arith.constant 0 : index
    %c0_17 = arith.constant 0 : index
    %c0_18 = arith.constant 0 : index
    %32 = vector.load %arg6[%c0_16, %c0_17, %c0_18] : memref<1x8x32xf32, #tpu.memory_space<vmem>>, vector<1x8x32xf32>
    %33 = vector.shape_cast %32 : vector<1x8x32xf32> to vector<8x32xf32>
    %34 = vector.shape_cast %31 : vector<8x32xf32> to vector<1x8x32xf32>
    tpu.vector_store %arg6[%c0_16, %c0_17, %c0_18], %34 {strides = array<i32>} : memref<1x8x32xf32, #tpu.memory_space<vmem>>, vector<1x8x32xf32>,
    return
  }
  func.func @transform_0(%arg0: i32, %arg1: i32) -> (i32, i32, i32) {
    %c0_i32 = arith.constant 0 : i32
    %c0_i32_0 = arith.constant 0 : i32
    return %arg0, %arg1, %c0_i32 : i32, i32, i32
  }
  func.func @transform_1(%arg0: i32, %arg1: i32) -> (i32, i32, i32) {
    %c0_i32 = arith.constant 0 : i32
    %c0_i32_0 = arith.constant 0 : i32
    return %arg0, %arg1, %c0_i32 : i32, i32, i32
  }
  func.func @transform_2(%arg0: i32, %arg1: i32) -> (i32, i32) {
    %c0_i32 = arith.constant 0 : i32
    %c0_i32_0 = arith.constant 0 : i32
    %c0_i32_1 = arith.constant 0 : i32
    return %c0_i32, %c0_i32_0 : i32, i32
  }
  func.func @transform_3(%arg0: i32, %arg1: i32) -> (i32, i32) {
    %c0_i32 = arith.constant 0 : i32
    %c0_i32_0 = arith.constant 0 : i32
    %c0_i32_1 = arith.constant 0 : i32
    return %c0_i32, %c0_i32_0 : i32, i32
  }
  func.func @transform_4(%arg0: i32, %arg1: i32) -> (i32, i32, i32) {
    %c0_i32 = arith.constant 0 : i32
    %c0_i32_0 = arith.constant 0 : i32
    return %arg0, %arg1, %c0_i32 : i32, i32, i32
  }
}

module attributes {stable_mosaic.version = 11 : i64} {
  func.func @_flash_kernel(%arg0: i32, %arg1: i32, %arg2: i32, %arg3: memref<1x4x8x8xf32, #tpu.memory_space<vmem>>, %arg4: memref<1x4x16x8xf32, #tpu.memory_space<vmem>>, %arg5: memref<1x4x16x8xf32, #tpu.memory_space<vmem>>, %arg6: memref<1x1x16xf32, #tpu.memory_space<vmem>>, %arg7: memref<1x4x8x8xf32, #tpu.memory_space<vmem>>, %arg8: memref<4x8x1xf32, #tpu.memory_space<vmem>>, %arg9: memref<4x8x1xf32, #tpu.memory_space<vmem>>, %arg10: memref<4x8x8xf32, #tpu.memory_space<vmem>>) attributes {dimension_semantics = [#tpu.dimension_semantics<parallel>, #tpu.dimension_semantics<parallel>, #tpu.dimension_semantics<arbitrary>], iteration_bounds = array<i64: 2, 1, 1>, scalar_prefetch = 0 : i64, scratch_operands = 3 : i64, tpu.core_type = #tpu.core_type<tc>, window_params = [{transform_indices = @transform_0, window_bounds = array<i64: 1, 4, 8, 8>}, {transform_indices = @transform_1, window_bounds = array<i64: 1, 4, 16, 8>}, {transform_indices = @transform_2, window_bounds = array<i64: 1, 4, 16, 8>}, {transform_indices = @transform_3, window_bounds = array<i64: 1, 1, 16>}, {transform_indices = @transform_4, window_bounds = array<i64: 1, 4, 8, 8>}]} {
    %c0_i32 = arith.constant 0 : i32
    %0 = arith.cmpi eq, %arg2, %c0_i32 : i32
    %1 = arith.extui %0 : i1 to i32
    %c0_i32_0 = arith.constant 0 : i32
    %2 = arith.cmpi ne, %1, %c0_i32_0 : i32
    scf.if %2 {
      %cst_38 = arith.constant 0xFF800000 : f32
      %40 = vector.broadcast %cst_38 : f32 to vector<4x8x1xf32>
      %c0_39 = arith.constant 0 : index
      %c0_40 = arith.constant 0 : index
      %c0_41 = arith.constant 0 : index
      %41 = vector.load %arg8[%c0_39, %c0_40, %c0_41] : memref<4x8x1xf32, #tpu.memory_space<vmem>>, vector<4x8x1xf32>
      tpu.vector_store %arg8[%c0_39, %c0_40, %c0_41], %40 {strides = array<i32>} : memref<4x8x1xf32, #tpu.memory_space<vmem>>, vector<4x8x1xf32>,
      %cst_42 = arith.constant 0.000000e+00 : f32
      %42 = vector.broadcast %cst_42 : f32 to vector<4x8x1xf32>
      %c0_43 = arith.constant 0 : index
      %c0_44 = arith.constant 0 : index
      %c0_45 = arith.constant 0 : index
      %43 = vector.load %arg9[%c0_43, %c0_44, %c0_45] : memref<4x8x1xf32, #tpu.memory_space<vmem>>, vector<4x8x1xf32>
      tpu.vector_store %arg9[%c0_43, %c0_44, %c0_45], %42 {strides = array<i32>} : memref<4x8x1xf32, #tpu.memory_space<vmem>>, vector<4x8x1xf32>,
      %cst_46 = arith.constant 0.000000e+00 : f32
      %44 = vector.broadcast %cst_46 : f32 to vector<4x8x8xf32>
      %c0_47 = arith.constant 0 : index
      %c0_48 = arith.constant 0 : index
      %c0_49 = arith.constant 0 : index
      %45 = vector.load %arg10[%c0_47, %c0_48, %c0_49] : memref<4x8x8xf32, #tpu.memory_space<vmem>>, vector<4x8x8xf32>
      tpu.vector_store %arg10[%c0_47, %c0_48, %c0_49], %44 {strides = array<i32>} : memref<4x8x8xf32, #tpu.memory_space<vmem>>, vector<4x8x8xf32>,
    } else {
    }
    %c0 = arith.constant 0 : index
    %c0_1 = arith.constant 0 : index
    %c0_2 = arith.constant 0 : index
    %c0_3 = arith.constant 0 : index
    %3 = vector.load %arg3[%c0, %c0_1, %c0_2, %c0_3] : memref<1x4x8x8xf32, #tpu.memory_space<vmem>>, vector<1x4x8x8xf32>
    %4 = vector.shape_cast %3 : vector<1x4x8x8xf32> to vector<4x8x8xf32>
    %c0_4 = arith.constant 0 : index
    %c0_5 = arith.constant 0 : index
    %c0_6 = arith.constant 0 : index
    %c0_7 = arith.constant 0 : index
    %5 = vector.load %arg4[%c0_4, %c0_5, %c0_6, %c0_7] : memref<1x4x16x8xf32, #tpu.memory_space<vmem>>, vector<1x4x16x8xf32>
    %6 = vector.shape_cast %5 : vector<1x4x16x8xf32> to vector<4x16x8xf32>
    "tpu.trace_start"() <{level = 10 : i32, message = "hqd,hkd->hqk"}> : () -> ()
    %cst = arith.constant dense<0.000000e+00> : vector<4x8x16xf32>
    %7 = tpu.matmul %4, %6, %cst {dimension_numbers = #tpu.dot_dimension_numbers<[2], [2], [1], [1], [0, 0, 0, 1, 1, 1], [0], [0]>} : vector<4x8x8xf32>, vector<4x16x8xf32>, vector<4x8x16xf32> -> vector<4x8x16xf32>
    "tpu.trace_stop"() : () -> ()
    %c0_8 = arith.constant 0 : index
    %c0_9 = arith.constant 0 : index
    %c0_10 = arith.constant 0 : index
    %8 = vector.load %arg6[%c0_8, %c0_9, %c0_10] : memref<1x1x16xf32, #tpu.memory_space<vmem>>, vector<1x1x16xf32>
    %9 = vector.shape_cast %8 : vector<1x1x16xf32> to vector<1x16xf32>
    %10 = vector.shape_cast %9 : vector<1x16xf32> to vector<1x1x16xf32>
    %11 = vector.broadcast %10 : vector<1x1x16xf32> to vector<4x8x16xf32>
    %12 = arith.addf %7, %11 : vector<4x8x16xf32>
    %c0_11 = arith.constant 0 : index
    %c0_12 = arith.constant 0 : index
    %c0_13 = arith.constant 0 : index
    %13 = vector.load %arg8[%c0_11, %c0_12, %c0_13] : memref<4x8x1xf32, #tpu.memory_space<vmem>>, vector<4x8x1xf32>
    %cst_14 = arith.constant dense<0xFF800000> : vector<4x8xf32>
    %14 = vector.multi_reduction <maximumf>, %12, %cst_14 [2] : vector<4x8x16xf32> to vector<4x8xf32>
    %15 = vector.shape_cast %14 : vector<4x8xf32> to vector<4x8x1xf32>
    %16 = arith.maximumf %13, %15 : vector<4x8x1xf32>
    %17 = arith.subf %13, %16 : vector<4x8x1xf32>
    %18 = math.exp %17 : vector<4x8x1xf32>
    %19 = vector.broadcast %16 : vector<4x8x1xf32> to vector<4x8x16xf32>
    %20 = arith.subf %12, %19 : vector<4x8x16xf32>
    %21 = math.exp %20 : vector<4x8x16xf32>
    %c0_15 = arith.constant 0 : index
    %c0_16 = arith.constant 0 : index
    %c0_17 = arith.constant 0 : index
    %22 = vector.load %arg9[%c0_15, %c0_16, %c0_17] : memref<4x8x1xf32, #tpu.memory_space<vmem>>, vector<4x8x1xf32>
    %23 = arith.mulf %18, %22 : vector<4x8x1xf32>
    %cst_18 = arith.constant dense<0.000000e+00> : vector<4x8xf32>
    %24 = vector.multi_reduction <add>, %21, %cst_18 [2] : vector<4x8x16xf32> to vector<4x8xf32>
    %25 = vector.shape_cast %24 : vector<4x8xf32> to vector<4x8x1xf32>
    %26 = arith.addf %23, %25 : vector<4x8x1xf32>
    %c0_19 = arith.constant 0 : index
    %c0_20 = arith.constant 0 : index
    %c0_21 = arith.constant 0 : index
    %27 = vector.load %arg9[%c0_19, %c0_20, %c0_21] : memref<4x8x1xf32, #tpu.memory_space<vmem>>, vector<4x8x1xf32>
    tpu.vector_store %arg9[%c0_19, %c0_20, %c0_21], %26 {strides = array<i32>} : memref<4x8x1xf32, #tpu.memory_space<vmem>>, vector<4x8x1xf32>,
    %c0_22 = arith.constant 0 : index
    %c0_23 = arith.constant 0 : index
    %c0_24 = arith.constant 0 : index
    %28 = vector.load %arg10[%c0_22, %c0_23, %c0_24] : memref<4x8x8xf32, #tpu.memory_space<vmem>>, vector<4x8x8xf32>
    %29 = vector.broadcast %18 : vector<4x8x1xf32> to vector<4x8x8xf32>
    %30 = arith.mulf %29, %28 : vector<4x8x8xf32>
    %c0_25 = arith.constant 0 : index
    %c0_26 = arith.constant 0 : index
    %c0_27 = arith.constant 0 : index
    %c0_28 = arith.constant 0 : index
    %31 = vector.load %arg5[%c0_25, %c0_26, %c0_27, %c0_28] : memref<1x4x16x8xf32, #tpu.memory_space<vmem>>, vector<1x4x16x8xf32>
    %32 = vector.shape_cast %31 : vector<1x4x16x8xf32> to vector<4x16x8xf32>
    "tpu.trace_start"() <{level = 10 : i32, message = "hqk,hkd->hqd"}> : () -> ()
    %cst_29 = arith.constant dense<0.000000e+00> : vector<4x8x8xf32>
    %33 = tpu.matmul %21, %32, %cst_29 {dimension_numbers = #tpu.dot_dimension_numbers<[2], [1], [1], [2], [0, 0, 0, 1, 1, 2], [0], [0]>} : vector<4x8x16xf32>, vector<4x16x8xf32>, vector<4x8x8xf32> -> vector<4x8x8xf32>
    "tpu.trace_stop"() : () -> ()
    %34 = arith.addf %30, %33 : vector<4x8x8xf32>
    %c0_30 = arith.constant 0 : index
    %c0_31 = arith.constant 0 : index
    %c0_32 = arith.constant 0 : index
    %35 = vector.load %arg10[%c0_30, %c0_31, %c0_32] : memref<4x8x8xf32, #tpu.memory_space<vmem>>, vector<4x8x8xf32>
    tpu.vector_store %arg10[%c0_30, %c0_31, %c0_32], %34 {strides = array<i32>} : memref<4x8x8xf32, #tpu.memory_space<vmem>>, vector<4x8x8xf32>,
    %c0_33 = arith.constant 0 : index
    %c0_34 = arith.constant 0 : index
    %c0_35 = arith.constant 0 : index
    %36 = vector.load %arg8[%c0_33, %c0_34, %c0_35] : memref<4x8x1xf32, #tpu.memory_space<vmem>>, vector<4x8x1xf32>
    tpu.vector_store %arg8[%c0_33, %c0_34, %c0_35], %16 {strides = array<i32>} : memref<4x8x1xf32, #tpu.memory_space<vmem>>, vector<4x8x1xf32>,
    %c0_i32_36 = arith.constant 0 : i32
    %37 = arith.cmpi eq, %arg2, %c0_i32_36 : i32
    %38 = arith.extui %37 : i1 to i32
    %c0_i32_37 = arith.constant 0 : i32
    %39 = arith.cmpi ne, %38, %c0_i32_37 : i32
    scf.if %39 {
      %c0_38 = arith.constant 0 : index
      %c0_39 = arith.constant 0 : index
      %c0_40 = arith.constant 0 : index
      %40 = vector.load %arg10[%c0_38, %c0_39, %c0_40] : memref<4x8x8xf32, #tpu.memory_space<vmem>>, vector<4x8x8xf32>
      %c0_41 = arith.constant 0 : index
      %c0_42 = arith.constant 0 : index
      %c0_43 = arith.constant 0 : index
      %41 = vector.load %arg9[%c0_41, %c0_42, %c0_43] : memref<4x8x1xf32, #tpu.memory_space<vmem>>, vector<4x8x1xf32>
      %42 = vector.broadcast %41 : vector<4x8x1xf32> to vector<4x8x8xf32>
      %43 = arith.divf %40, %42 : vector<4x8x8xf32>
      %c0_44 = arith.constant 0 : index
      %c0_45 = arith.constant 0 : index
      %c0_46 = arith.constant 0 : index
      %c0_47 = arith.constant 0 : index
      %44 = vector.load %arg7[%c0_44, %c0_45, %c0_46, %c0_47] : memref<1x4x8x8xf32, #tpu.memory_space<vmem>>, vector<1x4x8x8xf32>
      %45 = vector.shape_cast %44 : vector<1x4x8x8xf32> to vector<4x8x8xf32>
      %46 = vector.shape_cast %43 : vector<4x8x8xf32> to vector<1x4x8x8xf32>
      tpu.vector_store %arg7[%c0_44, %c0_45, %c0_46, %c0_47], %46 {strides = array<i32>} : memref<1x4x8x8xf32, #tpu.memory_space<vmem>>, vector<1x4x8x8xf32>,
    } else {
    }
    return
  }
  func.func @transform_0(%arg0: i32, %arg1: i32, %arg2: i32) -> (i32, i32, i32, i32) {
    %c0_i32 = arith.constant 0 : i32
    %c0_i32_0 = arith.constant 0 : i32
    %c0_i32_1 = arith.constant 0 : i32
    return %arg0, %c0_i32, %arg1, %c0_i32_0 : i32, i32, i32, i32
  }
  func.func @transform_1(%arg0: i32, %arg1: i32, %arg2: i32) -> (i32, i32, i32, i32) {
    %c0_i32 = arith.constant 0 : i32
    %c0_i32_0 = arith.constant 0 : i32
    %c0_i32_1 = arith.constant 0 : i32
    return %arg0, %c0_i32, %arg2, %c0_i32_0 : i32, i32, i32, i32
  }
  func.func @transform_2(%arg0: i32, %arg1: i32, %arg2: i32) -> (i32, i32, i32, i32) {
    %c0_i32 = arith.constant 0 : i32
    %c0_i32_0 = arith.constant 0 : i32
    %c0_i32_1 = arith.constant 0 : i32
    return %arg0, %c0_i32, %arg2, %c0_i32_0 : i32, i32, i32, i32
  }
  func.func @transform_3(%arg0: i32, %arg1: i32, %arg2: i32) -> (i32, i32, i32) {
    %c0_i32 = arith.constant 0 : i32
    %c0_i32_0 = arith.constant 0 : i32
    return %arg0, %c0_i32, %arg2 : i32, i32, i32
  }
  func.func @transform_4(%arg0: i32, %arg1: i32, %arg2: i32) -> (i32, i32, i32, i32) {
    %c0_i32 = arith.constant 0 : i32
    %c0_i32_0 = arith.constant 0 : i32
    %c0_i32_1 = arith.constant 0 : i32
    return %arg0, %c0_i32, %arg1, %c0_i32_0 : i32, i32, i32, i32
  }
}

</mosaic_0001>

<bundles_post_ra>
// kernel: entity_aware_bert_attention.6
= control target key start
LH: loop header
LB: loop body
LE: loop exit
PB: predicated region body
PF: predicated region fallthrough
CT: control target
= control target key end

     0   :  { %9 = vsyncpa [#allocation3], 0  ;;  %s804_s0 = inlined_call_operand.vmem [shape: f32[2,8,32], index: 0, kind: input, shape index: {}]   ;;  %s805_s1 = inlined_call_operand.vmem [shape: f32[2,8,32], index: 1, kind: input, shape index: {}]   ;;  %s806_s2 = inlined_call_operand.vmem [shape: f32[32,32], index: 2, kind: input, shape index: {}]   ;;  %s807_s3 = inlined_call_operand.vmem [shape: f32[3,32], index: 3, kind: input, shape index: {}]   ;;  %s808_s4 = inlined_call_operand.hbm [shape: f32[2,8,32], index: 4, kind: output, shape index: {}]  }
   0x1   :  { %11 = vsyncpa [#allocation3 + $0x1], 0  ;;  %s673_s15 = smov 0   ;;  %s675_s16 = smov 0  }
   0x2   :  { %s677_s17 = smov 0   ;;  %s679_s18 = smov 0  }
   0x3   :  { %s681_s19 = smov 0   ;;  %s683_s20 = smov 0  }
   0x4 LB: > { %s472_s21 = sadd.s32 4294967295, %s643_s20   ;;  %s473_s22 = sadd.s32 4294967294, %s643_s20   ;;  %s643_s20 = sphi %s683_s20, %s17_s20   ;;  %s639_s19 = sphi %s681_s19, %s815_s19   ;;  %s635_s18 = sphi %s679_s18, %s814_s18   ;;  %s631_s17 = sphi %s677_s17, %s813_s17   ;;  %s627_s16 = sphi %s675_s16, %s812_s16   ;;  %s623_s15 = sphi %s673_s15, %s811_s15  }
   0x5   : > { %s29_s23 = sadd.s32 1, %s639_s19  ;;  %s136_s24 = sadd.s32 1, %s631_s17 }
   0x6   : > { %p31_p0 = scmp.ge.s32.totalorder %s29_s23, 2  ;;  %p146_p1 = scmp.ne.s32.totalorder %s631_s17, %s627_s16 }
   0x7   : > { %p147_p2 = scmp.eq.s32.totalorder %s472_s21, 1  ;;  %p152_p3 = scmp.ne.s32.totalorder %s627_s16, %s623_s15 }
   0x8   : > { %s817_s23 = smov (%p31_p0, %s29_s23), 0  ;;  %p153_p5 = scmp.eq.s32.totalorder %s473_s22, 1 }
   0x9   : > { %p713_p4 = por %p147_p2, %p146_p1  ;;  %s131_s26 = ssub.s32 %s639_s19, %s817_s23 }
   0xa   : > { %p476_p6 = scmp.ge.s32.totalorder %s643_s20, 1  ;;  %p134_p7 = scmp.eq.s32.totalorder %s131_s26, 0 }
   0xb   : > { %p720_p8 = por %p153_p5, %p152_p3  ;;  %p197_p9 = scmp.lt.s32.totalorder %s643_s20, 3 }
   0xc   : > { %s726_s28 = scalar_select %p134_p7, %s631_s17, %s136_s24  }
   0xd   : > { %p198_p10 = pnand %p476_p6, %p197_p9 }
   0xe   : > { %p232_p11 = scmp.lt.s32.totalorder (!%p198_p10), %s635_s18, 1  ;;  %s229_s5 = sand.u32 (!%p198_p10), 1, %s627_s16  }
   0xf   : > { %201 = sbr.rel (%p198_p10) target bundleno = 555 (0x22b), region = 36  ;;  %s477_s6 = sshll.u32 (!%p198_p10), %s229_s5, 3 }
  0x10   : > { %s489_s11 = sshll.u32 (!%p198_p10), %s635_s18, 7  ;;  %s231_s12 = scalar_lea.vmem (!%p198_p10), [#allocation2], %s477_s6 }
  0x11   : > { %s386_s13 = sshll.u32 (!%p198_p10), %s231_s12, 4  ;;  %s384_s22 = scalar_lea.hbm (!%p198_p10), %s808_s4, %s489_s11  ;;  %s387_s13 = int_to_ptr.vmem [resolvable:$true] %s386_s13 }
  0x12   : > { %s372_s24 = scalar_lea.sflag (!%p198_p10), [#allocation3], %s229_s5  ;;  %s647_s29 = smov (!%p198_p10), [#allocation2]  }
  0x13   : > { %s571_s30 = sshll.u32 (!%p198_p10), %s647_s29, 4  ;;  %s572_s30 = int_to_ptr.vmem [resolvable:$false] %s571_s30 }
  0x14   : > { %v250_v0 = vld [vmem:[%s806_s2 + $0x18] sm:$0xff]  ;;  %vm256_vm0 = vcmask 261120   ;;  %v645_v1 = vmov 0.0   ;;  %vm646_vm1 = vmmov 0   ;;  %v249_v2 = vld [vmem:[%s806_s2 + $0x10] sm:$0xff]  ;;  %s233_s7 = scalar_select %p232_p11, %s635_s18, 1 }
  0x15   : > { %497 = vmatprep.subr.mxu0 %v645_v1  ;;  %505 = vmatprep.mubr.msk.f32.mxu0 %vm646_vm1, %v645_v1  ;;  %v248_v3 = vld [vmem:[%s806_s2 + $0x8] sm:$0xff]  ;;  %v247_v4 = vld [vmem:[%s806_s2] sm:$0xff]  ;;  %s573_s18 = scalar_lea.vmem %s572_s30, 256  ;;  %p574_p1 = scmp.lt.s32.totalorder %s387_s13, %s572_s30 }
  0x16   : > { %498 = vmatpush3.xpose.msk.msra.mxu0 %vm256_vm0, %v250_v0  ;;  %s478_s10 = sshll.u32 %s233_s7, 3  ;;  %v480_v6 = vld [vmem:[%s807_s3] ss:$0 sm:$0xff]  ;;  %v486_v22 = vld [vmem:[%s807_s3 + $0x1] ss:$0 sm:$0xff] }
  0x17   : > { %499 = vmatprep.subr.mxu0 %v645_v1  ;;  %s238_s21 = scalar_lea.vmem %s804_s0, %s478_s10  ;;  %s245_s26 = scalar_lea.vmem %s805_s1, %s478_s10  ;;  %v487_v24 = vld [vmem:[%s807_s3 + $0x2] ss:$0 sm:$0xff] }
  0x18   : > { %v246_v5 = vld [vmem:[%s238_s21] sm:$0xff] }
  0x19   : > { %v342_v8 = vld [vmem:[%s245_s26] sm:$0xff]  ;;  %s567_s26 = scalar_lea.vmem %s387_s13, 128 }
  0x1a   : > { %500 = vmatpush3.xpose.msk.msra.mxu0 %vm256_vm0, %v249_v2  ;;  %p568_p12 = scmp.ne.s32.totalorder %s387_s13, %s567_s26  ;;  %p575_p2 = scmp.lt.s32.totalorder %s573_s18, %s567_s26 }
  0x1b   : > { %501 = vmatprep.subr.mxu0 %v645_v1 }
  0x1c   : > { %p569_p13 = pnand %p568_p12, %p713_p4  ;;  %p576_p3 = por %p575_p2, %p574_p1 }
  0x1e   : > { %502 = vmatpush3.xpose.msk.msra.mxu0 %vm256_vm0, %v248_v3  ;;  %p570_p0 = pneg %p569_p13 }
  0x1f   : > { %503 = vmatprep.subr.mxu0 %v645_v1 }
  0x20   : > { %p577_p5 = pnand %p576_p3, %p570_p0 }
  0x22   : > { %504 = vmatpush3.xpose.msk.msra.mxu0 %vm256_vm0, %v247_v4 }
  0x25   : > { %506 = vmatmul.mubr.msk.f32.vlgmr.msra.gmra.mxu0 %vm256_vm0, %v246_v5 }
  0xe5   : > { %v338_v7 = vpop.f32.mrf.mxu0 }
  0xe6   : > { %v339_v9 = vadd.f32 %v480_v6, %v338_v7 }
  0xe7   : > { %v507_v10 = vpop.f32.mrf.mxu0 }
  0xe8   : > { %v343_v11 = vadd.f32 %v342_v8, %v339_v9 }
  0xea   : > { %v344_v12 = vsel %vm256_vm0, %v343_v11, 0.0 }
  0xeb   : > { %345 = vadd.xlane.f32.xlu0 %v344_v12 }
 0x174   : > { %v346_v13 = vpop.xlane.xlu0 %345 }
 0x175   : > { %v348_v14 = vmul.f32 0.03125, %v346_v13 }
 0x177   : > { %v349_v15 = vsub.f32 %v343_v11, %v348_v14 }
 0x179   : > { %v350_v16 = vmul.f32 %v349_v15, %v349_v15 }
 0x17b   : > { %v351_v17 = vsel %vm256_vm0, %v350_v16, 0.0 }
 0x17c   : > { %352 = vadd.xlane.f32.xlu0 %v351_v17 }
 0x205   : > { %v353_v18 = vpop.xlane.xlu0 %352 }
 0x206   : > { %v354_v19 = vmul.f32 0.03125, %v353_v18 }
 0x208   : > { %v355_v20 = vadd.f32 1e-12, %v354_v19 }
 0x20a   : > { %565 = vrsqrt.f32 %v355_v20 }
 0x217   : > { %v566_v21 = vpop.eup %565 }
 0x218   : > { %v357_v23 = vmul.f32 %v566_v21, %v349_v15 }
 0x21a   : > { %v363_v25 = vmul.f32 %v486_v22, %v357_v23 }
 0x21c   : > { %v369_v26 = vadd.f32 %v487_v24, %v363_v25 }
 0x21e   : > { %370 = vst.msk [vmem:[%s231_s12] sm:$0xff] %vm256_vm0, %v369_v26 }
 0x21f   : > { %580 = shalt.err (!%p577_p5)
}
 0x220   : > { %s581_s6 = scalar_lea.hbm %s384_s22, 128  ;;  %s585_s8 = scalar_lea.hbm %s808_s4, 256 }
 0x221   : > { %p582_p6 = scmp.ne.s32.totalorder %s384_s22, %s581_s6  ;;  %p586_p10 = scmp.lt.s32.totalorder %s384_s22, %s808_s4 }
 0x222   : > { %p587_p11 = scmp.lt.s32.totalorder %s585_s8, %s581_s6 }
 0x223   : > { %p583_p7 = pnand %p582_p6, %p713_p4 }
 0x224   : > { %p588_p12 = por %p587_p11, %p586_p10 }
 0x225   : > { %p584_p9 = pneg %p583_p7 }
 0x227   : > { %p589_p13 = pnand %p588_p12, %p584_p9 }
 0x229   : > { %592 = shalt.err (!%p589_p13)
}
 0x22a   : > { %508 = dma.vmem_to_hbm [thread:$0]  (%p713_p4), %s387_s13, 128, %s384_s22, %s372_s24  }
 0x22b PF: > { %p514_p0 = scmp.ge.s32.totalorder %s643_s20, 2  ;;  %s398_s11 = sand.u32 1, %s623_s15  }
 0x22c   : > { %s399_s12 = scalar_lea.sflag [#allocation3], %s398_s11 }
 0x22d   : > { %p511_p1 = pnand %p514_p0, %p720_p8 }
 0x22f   : > { %p512_p2 = pneg %p511_p1 }
 0x231   : > { %618 = dma.done.wait (%p512_p2), %s399_s12, 128  }
 0x232   : > { %620 = vsyncadd (%p512_p2), %s399_s12, 4294967168  ;;  %s17_s20 = sadd.s32 1, %s643_s20   ;;  %s811_s15 = smov %s627_s16 }
 0x233   : > { %p14_p3 = scmp.ge.s32.totalorder %s17_s20, 4   ;;  %s812_s16 = smov %s631_s17 }
 0x234   : > { %s813_s17 = smov %s726_s28  ;;  %s814_s18 = smov %s639_s19 }
 0x235   : > { %s815_s19 = smov %s817_s23  ;;  %16 = sbr.rel (!%p14_p3) target bundleno = 4 (0x4), region = 74 }
 0x23a   :  { %404 = vsyncpa [#allocation3], 1 }
 0x23b   :  { %406 = vsyncpa [#allocation3 + $0x1], 1 }

// kernel: entity_aware_bert_attention.4
= control target key start
LH: loop header
LB: loop body
LE: loop exit
PB: predicated region body
PF: predicated region fallthrough
CT: control target
= control target key end

     0   :  { %s1521_s15 = smov 0   ;;  %s1523_s16 = smov 0   ;;  %s1730_s0 = inlined_call_operand.vmem [shape: f32[2,4,8,8], index: 0, kind: input, shape index: {}]   ;;  %s1731_s1 = inlined_call_operand.vmem [shape: f32[2,4,16,8], index: 1, kind: input, shape index: {}]   ;;  %s1732_s2 = inlined_call_operand.vmem [shape: f32[2,4,16,8], index: 2, kind: input, shape index: {}]   ;;  %s1733_s3 = inlined_call_operand.vmem [shape: f32[2,1,16], index: 3, kind: input, shape index: {}]   ;;  %s1734_s4 = inlined_call_operand.vmem [shape: f32[2,4,8,8], index: 4, kind: output, shape index: {}]  }
   0x1   :  { %s1525_s17 = smov 0  }
   0x2 LB: > { %s33_s18 = sadd.s32 1, %s1486_s16  ;;  %p1302_p0 = scmp.ge.s32.totalorder %s1490_s17, 1  ;;  %s1490_s17 = sphi %s1525_s17, %s14_s17   ;;  %s1486_s16 = sphi %s1523_s16, %s1736_s16   ;;  %s1482_s15 = sphi %s1521_s15, %s1735_s15  }
   0x3   : > { %p35_p1 = scmp.ge.s32.totalorder %s33_s18, 2  ;;  %p235_p2 = scmp.lt.s32.totalorder %s1490_s17, 3 }
   0x5   : > { %s1738_s18 = smov (%p35_p1, %s33_s18), 0  ;;  %p236_p3 = pnand %p1302_p0, %p235_p2 }
   0x6   : > { %p291_p4 = scmp.lt.s32.totalorder (!%p236_p3), %s1482_s15, 1 }
   0x7   : > { %239 = sbr.rel (%p236_p3) target bundleno = 805 (0x325), region = 36 }
   0xc   : > { %vm346_vm0 = vcmask 64512   ;;  %v1492_v0 = vmov 0.0   ;;  %s1740_s15 = smov (!%p291_p4, %s1482_s15), 1  ;;  %vm1493_vm1 = vmmov 0   ;;  %vm337_vm2 = vcmask 7168  }
   0xd   : > { %1358 = vmatprep.subr.mxu0 %v1492_v0  ;;  %347 = vst.msk [vmem:[#allocation4] sm:$0xff] %vm346_vm0, %v1492_v0  ;;  %348 = vst.msk [vmem:[#allocation4 + $0x8] sm:$0xff] %vm346_vm0, %v1492_v0  ;;  %1365 = vmatprep.subr.mxu1 %v1492_v0  ;;  %s1331_s19 = sshll.u32 %s1740_s15, 6  ;;  %s1330_s23 = sshll.u32 %s1740_s15, 5  ;;  %v1494_v13 = vmov -inf   ;;  %vm691_vm3 = vcmask 130048  }
   0xe   : > { %349 = vst.msk [vmem:[#allocation4 + $0x10] sm:$0xff] %vm346_vm0, %v1492_v0  ;;  %350 = vst.msk [vmem:[#allocation4 + $0x18] sm:$0xff] %vm346_vm0, %v1492_v0  ;;  %1362 = vmatprep.mubr.msk.f32.mxu0 %vm1493_vm1, %v1492_v0  ;;  %1369 = vmatprep.mubr.msk.f32.mxu1 %vm1493_vm1, %v1492_v0  ;;  %s307_s22 = scalar_lea.vmem %s1731_s1, %s1331_s19  ;;  %s298_s26 = scalar_lea.vmem %s1730_s0, %s1330_s23  ;;  %v1495_v31 = vmov 0  }
   0xf   : > { %v356_v1 = vld [vmem:[%s307_s22 + $0x8] sm:$0xff]  ;;  %v358_v2 = vld [vmem:[%s307_s22 + $0x18] sm:$0xff]  ;;  %v355_v3 = vld [vmem:[%s307_s22] sm:$0xff]  ;;  %338 = vst.msk [vmem:[#allocation2] sm:$0xff] %vm337_vm2, %v1494_v13  ;;  %s324_s29 = scalar_lea.vmem %s1733_s3, %s1740_s15  ;;  %1442 = vset.pattern.permute.xlu0 %v1495_v31  ;;  %1443 = vset.pattern.permute.xlu1 %v1495_v31  ;;  %s1655_s6 = scalar_lea.vmem %s1732_s2, %s1331_s19 }
  0x10   : > { %1359 = vmatpush3.xpose.msk.msra.mxu0 %vm346_vm0, %v356_v1  ;;  %1366 = vmatpush3.xpose.msk.msra.mxu1 %vm346_vm0, %v358_v2  ;;  %v357_v4 = vld [vmem:[%s307_s22 + $0x10] sm:$0xff]  ;;  %v351_v5 = vld [vmem:[%s298_s26] sm:$0xff]  ;;  %v352_v6 = vld [vmem:[%s298_s26 + $0x8] sm:$0xff]  ;;  %339 = vst.msk [vmem:[#allocation2 + $0x8] sm:$0xff] %vm337_vm2, %v1494_v13  ;;  %s332_s9 = scalar_lea.vmem %s1734_s4, %s1330_s23 }
  0x11   : > { %1360 = vmatprep.subr.mxu0 %v1492_v0  ;;  %1367 = vmatprep.subr.mxu1 %v1492_v0  ;;  %v360_v7 = vld [vmem:[%s307_s22 + $0x28] sm:$0xff]  ;;  %v362_v8 = vld [vmem:[%s307_s22 + $0x38] sm:$0xff]  ;;  %v359_v9 = vld [vmem:[%s307_s22 + $0x20] sm:$0xff]  ;;  %340 = vst.msk [vmem:[#allocation2 + $0x10] sm:$0xff] %vm337_vm2, %v1494_v13 }
  0x12   : > { %v361_v10 = vld [vmem:[%s307_s22 + $0x30] sm:$0xff]  ;;  %v354_v12 = vld [vmem:[%s298_s26 + $0x18] sm:$0xff]  ;;  %341 = vst.msk [vmem:[#allocation2 + $0x18] sm:$0xff] %vm337_vm2, %v1494_v13  ;;  %342 = vst.msk [vmem:[#allocation3] sm:$0xff] %vm337_vm2, %v1492_v0 }
  0x13   : > { %v353_v11 = vld [vmem:[%s298_s26 + $0x10] sm:$0xff]  ;;  %343 = vst.msk [vmem:[#allocation3 + $0x8] sm:$0xff] %vm337_vm2, %v1492_v0  ;;  %344 = vst.msk [vmem:[#allocation3 + $0x10] sm:$0xff] %vm337_vm2, %v1492_v0  ;;  %v1311_v14 = vld [vmem:[%s324_s29] ss:$0 sm:$0xff] }
  0x14   : > { %1361 = vmatpush3.xpose.msk.msra.mxu0 %vm346_vm0, %v355_v3  ;;  %1368 = vmatpush3.xpose.msk.msra.mxu1 %vm346_vm0, %v357_v4  ;;  %345 = vst.msk [vmem:[#allocation3 + $0x18] sm:$0xff] %vm337_vm2, %v1492_v0  ;;  %v810_v47 = vld [vmem:[%s1655_s6 + $0x8] sm:$0xff]  ;;  %v809_v49 = vld [vmem:[%s1655_s6] sm:$0xff]  ;;  %v812_v50 = vld [vmem:[%s1655_s6 + $0x18] sm:$0xff] }
  0x15   : > { %1372 = vmatprep.subr.mxu0 %v1492_v0  ;;  %1379 = vmatprep.subr.mxu1 %v1492_v0  ;;  %v811_v51 = vld [vmem:[%s1655_s6 + $0x10] sm:$0xff]  ;;  %v814_v1 = vld [vmem:[%s1655_s6 + $0x28] sm:$0xff]  ;;  %v813_v4 = vld [vmem:[%s1655_s6 + $0x20] sm:$0xff] }
  0x16   : > { %v1618_v32 = vld [vmem:[#allocation2] sm:$0xff] }
  0x17   : > { %1363 = vmatmul.mubr.msk.f32.vlgmr.msra.gmra.mxu0 %vm346_vm0, %v351_v5  ;;  %1370 = vmatmul.mubr.msk.f32.vlgmr.msra.gmra.mxu1 %vm346_vm0, %v352_v6  ;;  %v1623_v35 = vld [vmem:[#allocation2 + $0x8] sm:$0xff]  ;;  %v816_v5 = vld [vmem:[%s1655_s6 + $0x38] sm:$0xff] }
  0x18   : > { %1373 = vmatpush3.xpose.msk.msra.mxu0 %vm346_vm0, %v360_v7  ;;  %1380 = vmatpush3.xpose.msk.msra.mxu1 %vm346_vm0, %v362_v8  ;;  %v1633_v39 = vld [vmem:[#allocation2 + $0x10] sm:$0xff] }
  0x19   : > { %1374 = vmatprep.subr.mxu0 %v1492_v0  ;;  %1381 = vmatprep.subr.mxu1 %v1492_v0  ;;  %v1643_v43 = vld [vmem:[#allocation2 + $0x18] sm:$0xff]  ;;  %v815_v8 = vld [vmem:[%s1655_s6 + $0x30] sm:$0xff] }
  0x1a   : > { %1376 = vmatprep.mubr.msk.f32.mxu0 %vm1493_vm1, %v1492_v0  ;;  %1383 = vmatprep.mubr.msk.f32.mxu1 %vm1493_vm1, %v1492_v0 }
  0x1b   : > { %v755_v31 = vld [vmem:[#allocation3 + $0x18] sm:$0xff] }
  0x1c   : > { %1375 = vmatpush3.xpose.msk.msra.mxu0 %vm346_vm0, %v359_v9  ;;  %1382 = vmatpush3.xpose.msk.msra.mxu1 %vm346_vm0, %v361_v10 }
  0x1d   : > { %1386 = vmatprep.subr.mxu0 %v1492_v0  ;;  %1393 = vmatprep.subr.mxu1 %v1492_v0 }
  0x1f   : > { %1377 = vmatmul.mubr.msk.f32.vlgmr.msra.gmra.mxu0 %vm346_vm0, %v353_v11  ;;  %1384 = vmatmul.mubr.msk.f32.vlgmr.msra.gmra.mxu1 %vm346_vm0, %v354_v12 }
  0x20   : > { %1390 = vmatprep.mubr.msk.f32.mxu0 %vm1493_vm1, %v1492_v0  ;;  %1397 = vmatprep.mubr.msk.f32.mxu1 %vm1493_vm1, %v1492_v0 }
  0x21   : > { %1387 = vmatpush3.msra.mxu0 %v810_v47  ;;  %1394 = vmatpush3.msra.mxu1 %v812_v50 }
  0x22   : > { %1388 = vmatprep.subr.mxu0 %v1492_v0  ;;  %1395 = vmatprep.subr.mxu1 %v1492_v0 }
  0x23   : > { %1389 = vmatpush3.msra.mxu0 %v809_v49  ;;  %1396 = vmatpush3.msra.mxu1 %v811_v51 }
  0x24   : > { %1400 = vmatprep.subr.mxu0 %v1492_v0  ;;  %1407 = vmatprep.subr.mxu1 %v1492_v0 }
  0xd7   : > { %v446_v15 = vpop.f32.mrf.mxu0  ;;  %v525_v16 = vpop.f32.mrf.mxu1 }
  0xd8   : > { %v447_v17 = vadd.f32 %v1311_v14, %v446_v15  ;;  %v1611_v18 = vadd.f32 %v1311_v14, %v525_v16 }
  0xd9   : > { %v1364_v19 = vpop.f32.mrf.mxu0  ;;  %v1371_v20 = vpop.f32.mrf.mxu1 }
  0xda   : > { %v692_v21 = vsel %vm691_vm3, %v447_v17, -inf  ;;  %v695_v22 = vsel %vm691_vm3, %v1611_v18, -inf }
  0xdb   : > { %693 = vmax.xlane.f32.xlu0 %v692_v21  ;;  %v753_v21 = vld [vmem:[#allocation3 + $0x8] sm:$0xff] }
  0xdf   : > { %696 = vmax.xlane.f32.xlu0 %v695_v22  ;;  %v604_v23 = vpop.f32.mrf.mxu0  ;;  %v683_v24 = vpop.f32.mrf.mxu1 }
  0xe0   : > { %v605_v25 = vadd.f32 %v1311_v14, %v604_v23  ;;  %v684_v26 = vadd.f32 %v1311_v14, %v683_v24 }
  0xe1   : > { %v1378_v27 = vpop.f32.mrf.mxu0  ;;  %v1385_v28 = vpop.f32.mrf.mxu1 }
  0xe2   : > { %v698_v29 = vsel %vm691_vm3, %v605_v25, -inf  ;;  %v701_v30 = vsel %vm691_vm3, %v684_v26, -inf }
  0xe3   : > { %699 = vmax.xlane.f32.xlu1 %v698_v29 }
  0xe7   : > { %702 = vmax.xlane.f32.xlu1 %v701_v30 }
 0x164   : > { %v694_v33 = vpop.xlane.xlu0 %693 }
 0x165   : > { %v1621_v34 = vmax.f32 %v1618_v32, %v694_v33 }
 0x167   : > { %v708_v36 = vsub.f32 %v1618_v32, %v1621_v34  ;;  %1117 = vst.msk [vmem:[#allocation2] sm:$0xff] %vm337_vm2, %v1621_v34  ;;  %722 = vperm.xlu0 %1442, %v1621_v34  }
 0x168   : > { %v697_v37 = vpop.xlane.xlu0 %696 }
 0x169   : > { %v1631_v38 = vmax.f32 %v1623_v35, %v697_v37  ;;  %v712_v13 = vmul.f32 1.442695, %v708_v36 }
 0x16b   : > { %v709_v40 = vsub.f32 %v1623_v35, %v1631_v38  ;;  %1118 = vst.msk [vmem:[#allocation2 + $0x8] sm:$0xff] %vm337_vm2, %v1631_v38  ;;  %727 = vperm.xlu1 %1443, %v1631_v38  }
 0x16c   : > { %v700_v41 = vpop.xlane.xlu1 %699 }
 0x16d   : > { %v1641_v42 = vmax.f32 %v1633_v39, %v700_v41  ;;  %v714_v11 = vmul.f32 1.442695, %v709_v40  ;;  %v781_v40 = vld [vmem:[#allocation4] sm:$0xff] }
 0x16f   : > { %v710_v44 = vsub.f32 %v1633_v39, %v1641_v42  ;;  %1119 = vst.msk [vmem:[#allocation2 + $0x10] sm:$0xff] %vm337_vm2, %v1641_v42  ;;  %732 = vperm.xlu1 %1443, %v1641_v42  }
 0x170   : > { %v703_v45 = vpop.xlane.xlu1 %702 }
 0x171   : > { %v1658_v46 = vmax.f32 %v1643_v43, %v703_v45  ;;  %v716_v16 = vmul.f32 1.442695, %v710_v44 }
 0x173   : > { %v711_v48 = vsub.f32 %v1643_v43, %v1658_v46  ;;  %1120 = vst.msk [vmem:[#allocation2 + $0x18] sm:$0xff] %vm337_vm2, %v1658_v46  ;;  %737 = vperm.xlu1 %1443, %v1658_v46   ;;  %v782_v43 = vld [vmem:[#allocation4 + $0x8] sm:$0xff] }
 0x1e2   : > { %v723_v52 = vpop.permute.xlu0 %722 }
 0x1e3   : > { %v740_v53 = vsub.f32 %v447_v17, %v723_v52  ;;  %v718_v17 = vmul.f32 1.442695, %v711_v48 }
 0x1e5   : > { %v744_v54 = vmul.f32 1.442695, %v740_v53 }
 0x1e6   : > { %v728_v55 = vpop.permute.xlu1 %727 }
 0x1e7   : > { %1444 = vpow2.f32 %v744_v54  ;;  %v741_v56 = vsub.f32 %v1611_v18, %v728_v55  ;;  %v752_v18 = vld [vmem:[#allocation3] sm:$0xff] }
 0x1e9   : > { %v746_v57 = vmul.f32 1.442695, %v741_v56 }
 0x1ea   : > { %v733_v58 = vpop.permute.xlu1 %732 }
 0x1eb   : > { %1446 = vpow2.f32 %v746_v57  ;;  %v742_v59 = vsub.f32 %v605_v25, %v733_v58  ;;  %v784_v58 = vld [vmem:[#allocation4 + $0x18] sm:$0xff] }
 0x1ed   : > { %v748_v60 = vmul.f32 1.442695, %v742_v59 }
 0x1ee   : > { %v738_v61 = vpop.permute.xlu1 %737 }
 0x1ef   : > { %1448 = vpow2.f32 %v748_v60  ;;  %v743_v62 = vsub.f32 %v684_v26, %v738_v61  ;;  %v754_v26 = vld [vmem:[#allocation3 + $0x10] sm:$0xff] }
 0x1f1   : > { %v750_v63 = vmul.f32 1.442695, %v743_v62 }
 0x1f3   : > { %1450 = vpow2.f32 %v750_v63 }
 0x1f4   : > { %v1445_v2 = vpop.eup %1444  ;;  %1452 = vpow2.f32 %v714_v11 }
 0x1f5   : > { %1391 = vmatmul.mubr.msk.f32.vlgmr.msra.gmra.mxu0 %vm691_vm3, %v1445_v2  ;;  %v760_v3 = vsel %vm691_vm3, %v1445_v2, 0.0  ;;  %1454 = vpow2.f32 %v712_v13 }
 0x1f6   : > { %761 = vadd.xlane.f32.xlu1 %v760_v3  ;;  %1401 = vmatpush3.msra.mxu0 %v814_v1  ;;  %1456 = vpow2.f32 %v716_v16  ;;  %v783_v3 = vld [vmem:[#allocation4 + $0x10] sm:$0xff] }
 0x1f7   : > { %1402 = vmatprep.subr.mxu0 %v1492_v0  ;;  %1404 = vmatprep.mubr.msk.f32.mxu0 %vm1493_vm1, %v1492_v0  ;;  %1458 = vpow2.f32 %v718_v17 }
 0x1f8   : > { %v1447_v6 = vpop.eup %1446  ;;  %1403 = vmatpush3.msra.mxu0 %v813_v4 }
 0x1f9   : > { %1398 = vmatmul.mubr.msk.f32.vlgmr.msra.gmra.mxu1 %vm691_vm3, %v1447_v6  ;;  %v763_v7 = vsel %vm691_vm3, %v1447_v6, 0.0 }
 0x1fa   : > { %764 = vadd.xlane.f32.xlu0 %v763_v7  ;;  %1408 = vmatpush3.msra.mxu1 %v816_v5 }
 0x1fb   : > { %1409 = vmatprep.subr.mxu1 %v1492_v0  ;;  %1411 = vmatprep.mubr.msk.f32.mxu1 %vm1493_vm1, %v1492_v0 }
 0x1fc   : > { %v1449_v9 = vpop.eup %1448  ;;  %1410 = vmatpush3.msra.mxu1 %v815_v8 }
 0x1fd   : > { %1405 = vmatmul.mubr.msk.f32.vlgmr.msra.gmra.mxu0 %vm691_vm3, %v1449_v9  ;;  %v766_v10 = vsel %vm691_vm3, %v1449_v9, 0.0 }
 0x1fe   : > { %767 = vadd.xlane.f32.xlu1 %v766_v10 }
 0x200   : > { %v1451_v12 = vpop.eup %1450 }
 0x201   : > { %1412 = vmatmul.mubr.msk.f32.vlgmr.msra.gmra.mxu1 %vm691_vm3, %v1451_v12  ;;  %v769_v0 = vsel %vm691_vm3, %v1451_v12, 0.0  ;;  %v1453_v14 = vpop.eup %1452 }
 0x202   : > { %770 = vadd.xlane.f32.xlu1 %v769_v0  ;;  %v1455_v15 = vpop.eup %1454  ;;  %v757_v23 = vmul.f32 %v1453_v14, %v753_v21 }
 0x203   : > { %v756_v19 = vmul.f32 %v1455_v15, %v752_v18  ;;  %v1457_v24 = vpop.eup %1456 }
 0x204   : > { %v758_v28 = vmul.f32 %v1457_v24, %v754_v26  ;;  %v1459_v29 = vpop.eup %1458 }
 0x205   : > { %v759_v34 = vmul.f32 %v1459_v29, %v755_v31 }
 0x210   : > { %792 = vperm.xlu0 %1442, %v1453_v14  }
 0x213   : > { %787 = vperm.xlu1 %1443, %v1455_v15  }
 0x27f   : > { %v762_v20 = vpop.xlane.xlu1 %761 }
 0x280   : > { %v772_v22 = vadd.f32 %v762_v20, %v756_v19 }
 0x282   : > { %777 = vst.msk [vmem:[#allocation3] sm:$0xff] %vm337_vm2, %v772_v22 }
 0x283   : > { %v765_v25 = vpop.xlane.xlu0 %764 }
 0x284   : > { %v773_v27 = vadd.f32 %v765_v25, %v757_v23 }
 0x286   : > { %778 = vst.msk [vmem:[#allocation3 + $0x8] sm:$0xff] %vm337_vm2, %v773_v27 }
 0x287   : > { %v768_v30 = vpop.xlane.xlu1 %767 }
 0x288   : > { %v774_v32 = vadd.f32 %v768_v30, %v758_v28 }
 0x289   : > { %v1128_v33 = vld [vmem:[#allocation3] sm:$0xff] }
 0x28a   : > { %779 = vst.msk [vmem:[#allocation3 + $0x10] sm:$0xff] %vm337_vm2, %v774_v32  ;;  %1134 = vperm.xlu1 %1443, %v1128_v33  }
 0x28b   : > { %v771_v35 = vpop.xlane.xlu1 %770  ;;  %v793_v44 = vpop.permute.xlu0 %792 }
 0x28c   : > { %v775_v36 = vadd.f32 %v771_v35, %v759_v34  ;;  %v806_v48 = vmul.f32 %v793_v44, %v782_v43 }
 0x28d   : > { %v1129_v37 = vld [vmem:[#allocation3 + $0x8] sm:$0xff] }
 0x28e   : > { %780 = vst.msk [vmem:[#allocation3 + $0x18] sm:$0xff] %vm337_vm2, %v775_v36  ;;  %1139 = vperm.xlu0 %1442, %v1129_v37  }
 0x28f   : > { %v788_v41 = vpop.permute.xlu1 %787 }
 0x290   : > { %v805_v42 = vmul.f32 %v788_v41, %v781_v40 }
 0x291   : > { %v1130_v38 = vld [vmem:[#allocation3 + $0x10] sm:$0xff] }
 0x292   : > { %802 = vperm.xlu0 %1442, %v1459_v29   ;;  %1144 = vperm.xlu1 %1443, %v1130_v38  }
 0x295   : > { %v1131_v39 = vld [vmem:[#allocation3 + $0x18] sm:$0xff] }
 0x296   : > { %1149 = vperm.xlu1 %1443, %v1131_v39  }
 0x29a   : > { %797 = vperm.xlu1 %1443, %v1457_v24  }
 0x2b5   : > { %v886_v45 = vpop.f32.mrf.mxu0 }
 0x2b6   : > { %v1109_v46 = vadd.f32 %v886_v45, %v805_v42 }
 0x2b7   : > { %v1392_v47 = vpop.f32.mrf.mxu0 }
 0x2b8   : > { %1113 = vst.msk [vmem:[#allocation4] sm:$0xff] %vm346_vm0, %v1109_v46 }
 0x2b9   : > { %v959_v49 = vpop.f32.mrf.mxu1 }
 0x2ba   : > { %v1110_v50 = vadd.f32 %v959_v49, %v806_v48 }
 0x2bb   : > { %v1399_v51 = vpop.f32.mrf.mxu1 }
 0x2bc   : > { %1114 = vst.msk [vmem:[#allocation4 + $0x8] sm:$0xff] %vm346_vm0, %v1110_v50 }
 0x2bd   : > { %v1032_v52 = vpop.f32.mrf.mxu0 }
 0x2bf   : > { %v1406_v53 = vpop.f32.mrf.mxu0  ;;  %v1124_v2 = vld [vmem:[#allocation4] sm:$0xff] }
 0x2c1   : > { %v1105_v54 = vpop.f32.mrf.mxu1 }
 0x2c3   : > { %v1413_v55 = vpop.f32.mrf.mxu1  ;;  %v1125_v8 = vld [vmem:[#allocation4 + $0x8] sm:$0xff] }
 0x305   : > { %v1135_v56 = vpop.permute.xlu1 %1134 }
 0x306   : > { %1460 = vrcp.f32 %v1135_v56 }
 0x309   : > { %v1140_v57 = vpop.permute.xlu0 %1139 }
 0x30a   : > { %1462 = vrcp.f32 %v1140_v57 }
 0x30d   : > { %v803_v59 = vpop.permute.xlu0 %802  ;;  %v1145_v60 = vpop.permute.xlu1 %1144 }
 0x30e   : > { %v808_v61 = vmul.f32 %v803_v59, %v784_v58 }
 0x310   : > { %v1112_v62 = vadd.f32 %v1105_v54, %v808_v61 }
 0x311   : > { %v1150_v63 = vpop.permute.xlu1 %1149 }
 0x312   : > { %1116 = vst.msk [vmem:[#allocation4 + $0x18] sm:$0xff] %vm346_vm0, %v1112_v62  ;;  %1464 = vrcp.f32 %v1150_v63 }
 0x313   : > { %v1461_v1 = vpop.eup %1460  ;;  %1466 = vrcp.f32 %v1145_v60 }
 0x314   : > { %v1153_v4 = vmul.f32 %v1461_v1, %v1124_v2 }
 0x315   : > { %v798_v5 = vpop.permute.xlu1 %797 }
 0x316   : > { %1160 = vst.msk [vmem:[%s332_s9] sm:$0xff] %vm346_vm0, %v1153_v4  ;;  %v807_v6 = vmul.f32 %v798_v5, %v783_v3 }
 0x317   : > { %v1463_v7 = vpop.eup %1462 }
 0x318   : > { %v1155_v9 = vmul.f32 %v1463_v7, %v1125_v8  ;;  %v1111_v10 = vadd.f32 %v1032_v52, %v807_v6 }
 0x319   : > { %v1127_v12 = vld [vmem:[#allocation4 + $0x18] sm:$0xff] }
 0x31a   : > { %1161 = vst.msk [vmem:[%s332_s9 + $0x8] sm:$0xff] %vm346_vm0, %v1155_v9  ;;  %1115 = vst.msk [vmem:[#allocation4 + $0x10] sm:$0xff] %vm346_vm0, %v1111_v10 }
 0x31f   : > { %v1465_v11 = vpop.eup %1464 }
 0x320   : > { %v1159_v13 = vmul.f32 %v1465_v11, %v1127_v12  ;;  %v1467_v0 = vpop.eup %1466 }
 0x321   : > { %v1126_v14 = vld [vmem:[#allocation4 + $0x10] sm:$0xff] }
 0x322   : > { %1163 = vst.msk [vmem:[%s332_s9 + $0x18] sm:$0xff] %vm346_vm0, %v1159_v13  ;;  %v1157_v15 = vmul.f32 %v1467_v0, %v1126_v14 }
 0x324   : > { %1162 = vst.msk [vmem:[%s332_s9 + $0x10] sm:$0xff] %vm346_vm0, %v1157_v15 }
 0x325 PF: > { %s14_s17 = sadd.s32 1, %s1490_s17   ;;  %s1735_s15 = smov %s1486_s16 }
 0x326   : > { %p11_p5 = scmp.ge.s32.totalorder %s14_s17, 4   ;;  %s1736_s16 = smov %s1738_s18 }
 0x328   :  { %13 = sbr.rel (!%p11_p5) target bundleno = 2 (0x2), region = 83 }

</bundles_post_ra>
